<compile_context>
chip_gen: v7x
topology: tpu7x:2x2x1
jax: 0.10.0
libtpu: 0.0.40
codegen_flags: <defaults>
</compile_context>

<pallas_src>
import functools

import jax
import jax.numpy as jnp
from jax import lax
from jax.experimental import pallas as pl
from jax.experimental.pallas import tpu as pltpu


# ---------------------------------------------------------------------------
# Generation-aware sizing
# ---------------------------------------------------------------------------
def _physical_vmem_bytes():
    try:
        return int(pltpu.get_tpu_info().vmem_capacity_bytes)
    except Exception:
        return 64 * 1024 * 1024          # conservative (v7x) if query unavailable


_VMEM_PHYS = _physical_vmem_bytes()
# Fused path keeps in + out double-buffered slabs resident: ~4 * slab bytes.
_FUSED_SLAB_CAP = _VMEM_PHYS // 8        # 8 MiB on v7x, 16 MiB on v5e/v6e
# Streaming fallback block cap (per array; in + out double buffered).
_STREAM_BLOCK_CAP = _VMEM_PHYS // 16     # 4 MiB on v7x, 8 MiB on v5e/v6e
_VMEM_LIMIT_BYTES = min((3 * _VMEM_PHYS) // 4, 96 * 1024 * 1024)


def _pick_hw_tile(C, HW, itemsize):
    """Largest multiple-of-128 tile of HW that divides HW and keeps a (C, tile)
    block under the streaming byte cap; full extent if the slab already fits."""
    if C * HW * itemsize <= _STREAM_BLOCK_CAP:
        return HW
    cap_elems = max(_STREAM_BLOCK_CAP // (C * itemsize), 128)
    tile = (cap_elems // 128) * 128
    while tile >= 128:
        if HW % tile == 0:
            return tile
        tile -= 128
    # TODO(synk): non-128-divisible HW falls back to full rows (may exceed cap).
    return HW


# ---------------------------------------------------------------------------
# Fused kernel: std -> MLP logits -> bit selection -> PAMS quant, per batch
# ---------------------------------------------------------------------------
def _fused_kernel(base_ref, wstd_ref, qrows_ref, x_ref, o_ref, logits_ref, *, hw):
    x = x_ref[0]                                            # (C, HW)
    if x.dtype != jnp.float32:
        x = x.astype(jnp.float32)

    # ---- per-channel unbiased std over HW (exact two-pass) -------------------
    mean = jnp.sum(x, axis=-1, keepdims=True) * (1.0 / hw)  # (C, 1)
    d = x - mean
    var = jnp.sum(d * d, axis=-1, keepdims=True) * (1.0 / max(hw - 1, 1))
    std = jnp.sqrt(jnp.maximum(var, 0.0))                   # (C, 1)
    # Note: hw == 1 gives std = 0 (torch.std would give NaN) -- benign divergence.

    # ---- tiny MLP: logits = [grad, std] @ W.T + b -----------------------------
    # grad/bias contribution precomputed in the glue (base_ref); std part here.
    logits = base_ref[...] + jnp.sum(wstd_ref[...] * std, axis=0, keepdims=True)
    logits_ref[...] = logits                                # (1, nb)

    # ---- first-argmax one-hot (ties -> lowest index, matches torch.argmax) ---
    nb = logits.shape[-1]
    iot = lax.broadcasted_iota(jnp.int32, (1, nb), 1)
    mx = jnp.max(logits, axis=-1, keepdims=True)
    first = jnp.min(jnp.where(logits == mx, iot, nb), axis=-1, keepdims=True)
    onehot = (iot == first).astype(jnp.float32)             # (1, nb)

    # ---- per-batch PAMS parameters (per-level values precomputed in glue) ----
    alpha = jnp.sum(onehot * qrows_ref[0, :], axis=-1, keepdims=True)   # (1, 1)
    scale = jnp.sum(onehot * qrows_ref[1, :], axis=-1, keepdims=True)
    inv_s = jnp.sum(onehot * qrows_ref[2, :], axis=-1, keepdims=True)

    # ---- quantize the slab already resident in VMEM: clip, mul, round, mul ---
    xq = jnp.round(jnp.clip(x, -alpha, alpha) * inv_s) * scale
    o_ref[0] = xq.astype(o_ref.dtype)


def _fused_forward(x3, base_logits, w_std_t, qrows):
    B, C, HW = x3.shape
    nb = base_logits.shape[1]
    kernel = functools.partial(_fused_kernel, hw=HW)
    out, logits = pl.pallas_call(
        kernel,
        out_shape=(jax.ShapeDtypeStruct((B, C, HW), x3.dtype),
                   jax.ShapeDtypeStruct((B, nb), jnp.float32)),
        grid_spec=pltpu.PrefetchScalarGridSpec(
            num_scalar_prefetch=0,
            grid=(B,),
            in_specs=[
                pl.BlockSpec((1, nb), lambda b: (b, 0)),        # grad/bias logits
                pl.BlockSpec((C, nb), lambda b: (0, 0)),        # W[:, 2:].T
                pl.BlockSpec((3, nb), lambda b: (0, 0)),        # alpha/scale/1-scale
                pl.BlockSpec((1, C, HW), lambda b: (b, 0, 0)),  # x slab
            ],
            out_specs=[
                pl.BlockSpec((1, C, HW), lambda b: (b, 0, 0)),  # quantized slab
                pl.BlockSpec((1, nb), lambda b: (b, 0)),        # logits
            ],
        ),
        input_output_aliases={3: 0},       # x is dead after quantization
        compiler_params=pltpu.CompilerParams(
            dimension_semantics=("parallel",),
            vmem_limit_bytes=_VMEM_LIMIT_BYTES),
    )(base_logits, w_std_t, qrows, x3)
    return out, logits


# ---------------------------------------------------------------------------
# Streaming fallback (slab too big for VMEM): std kernel + quant kernel
# ---------------------------------------------------------------------------
def _std_stream_kernel(x_ref, std_ref, s1_sc, s2_sc, *, hw_total):
    t = pl.program_id(1)

    @pl.when(t == 0)
    def _():
        s1_sc[...] = jnp.zeros_like(s1_sc)
        s2_sc[...] = jnp.zeros_like(s2_sc)

    x = x_ref[0]                                            # (C, hw_tile)
    if x.dtype != jnp.float32:
        x = x.astype(jnp.float32)
    s1_sc[...] += jnp.sum(x, axis=-1, keepdims=True)        # (C, 1) natural layout
    s2_sc[...] += jnp.sum(x * x, axis=-1, keepdims=True)    # (C, 1)

    @pl.when(t == pl.num_programs(1) - 1)
    def _():
        # TODO(synk): single-pass sum/sumsq variance; Welford/shifted sums would
        # be more robust when |mean| >> std.
        mean = s1_sc[...] * (1.0 / hw_total)
        var = (s2_sc[...] - hw_total * mean * mean) * (1.0 / max(hw_total - 1, 1))
        std_ref[0] = jnp.sqrt(jnp.maximum(var, 0.0))        # (C, 1)


def _spatial_std_stream(x3):
    B, C, HW = x3.shape
    hw_t = _pick_hw_tile(C, HW, jnp.dtype(x3.dtype).itemsize)
    n_hw = HW // hw_t
    kernel = functools.partial(_std_stream_kernel, hw_total=HW)
    std = pl.pallas_call(
        kernel,
        out_shape=jax.ShapeDtypeStruct((B, C, 1), jnp.float32),
        grid_spec=pltpu.PrefetchScalarGridSpec(
            num_scalar_prefetch=0,
            grid=(B, n_hw),
            in_specs=[pl.BlockSpec((1, C, hw_t), lambda b, t: (b, 0, t))],
            out_specs=pl.BlockSpec((1, C, 1), lambda b, t: (b, 0, 0)),
            scratch_shapes=[pltpu.VMEM((C, 1), jnp.float32),
                            pltpu.VMEM((C, 1), jnp.float32)],
        ),
        compiler_params=pltpu.CompilerParams(
            dimension_semantics=("parallel", "arbitrary"),
            vmem_limit_bytes=_VMEM_LIMIT_BYTES),
    )(x3)
    return std[:, :, 0]                                     # (B, C)


def _quant_stream_kernel(alpha_ref, scale_ref, inv_ref, x_ref, o_ref):
    b = pl.program_id(0)
    alpha = alpha_ref[b]                                    # SMEM scalars, per batch
    scale = scale_ref[b]
    inv_s = inv_ref[b]
    x = x_ref[...]
    if x.dtype != jnp.float32:
        x = x.astype(jnp.float32)
    o_ref[...] = (jnp.round(jnp.clip(x, -alpha, alpha) * inv_s) * scale
                  ).astype(o_ref.dtype)


def _quant_stream(x3, alpha_b, scale_b, inv_b):
    B, C, HW = x3.shape
    hw_t = _pick_hw_tile(C, HW, jnp.dtype(x3.dtype).itemsize)
    n_hw = HW // hw_t
    return pl.pallas_call(
        _quant_stream_kernel,
        out_shape=jax.ShapeDtypeStruct((B, C, HW), x3.dtype),
        grid_spec=pltpu.PrefetchScalarGridSpec(
            num_scalar_prefetch=0,
            grid=(B, n_hw),
            in_specs=[
                pl.BlockSpec(memory_space=pltpu.MemorySpace.SMEM),   # alpha   (B,)
                pl.BlockSpec(memory_space=pltpu.MemorySpace.SMEM),   # scale   (B,)
                pl.BlockSpec(memory_space=pltpu.MemorySpace.SMEM),   # 1/scale (B,)
                pl.BlockSpec((1, C, hw_t), lambda b, t: (b, 0, t)),
            ],
            out_specs=pl.BlockSpec((1, C, hw_t), lambda b, t: (b, 0, t)),
        ),
        compiler_params=pltpu.CompilerParams(
            dimension_semantics=("parallel", "parallel"),
            vmem_limit_bytes=_VMEM_LIMIT_BYTES),
    )(alpha_b, scale_b, inv_b, x3)


# ---------------------------------------------------------------------------
# BitSelector forward (glue + kernels)
# ---------------------------------------------------------------------------
def init_bit_selector_params(n_feats, search_space=(4, 6, 8)):
    n_out = len(search_space)
    w = jnp.ones((n_out, n_feats + 2), jnp.float32)          # nn.init.ones_
    b = jnp.zeros((n_out,), jnp.float32).at[-1].set(1.0)     # zeros, bias[-1]=1
    alphas = jnp.full((n_out,), 10.0, jnp.float32)           # PAMS alpha init
    return {"w": w, "b": b, "alphas": alphas}


def bit_selector_forward(inputs, params, search_space=(4, 6, 8),
                         force_streaming=False):
    grad, x, bits, weighted_bits = inputs[0], inputs[1], inputs[2], inputs[3]
    B, C, H, W = x.shape
    HW = H * W

    # Lane-dense view (free for contiguous NCHW).
    x3 = x.reshape(B, C, HW)

    s = jnp.asarray(search_space, jnp.float32)               # (nb,)
    qmax = 2.0 ** (s - 1.0) - 1.0                            # per-level qmax
    alphas = params["alphas"].astype(jnp.float32)            # (nb,)
    scale_lvl = alphas / qmax
    inv_lvl = qmax / alphas

    slab_bytes = C * HW * jnp.dtype(x3.dtype).itemsize
    use_fused = (not force_streaming) and slab_bytes <= _FUSED_SLAB_CAP

    if use_fused:
        base_logits = (grad @ params["w"][:, :2].T
                       + params["b"][None, :]).astype(jnp.float32)     # (B, nb)
        w_std_t = params["w"][:, 2:].T.astype(jnp.float32)             # (C, nb)
        qrows = jnp.stack([alphas, scale_lvl, inv_lvl], axis=0)        # (3, nb)
        residual3, bit_type = _fused_forward(x3, base_logits, w_std_t, qrows)
    else:
        layer_std_s = lax.stop_gradient(_spatial_std_stream(x3))       # (B, C)
        x_embed = jnp.concatenate([grad, layer_std_s], axis=1)
        bit_type = x_embed @ params["w"].T + params["b"][None, :]      # (B, nb)
        flag_s = jnp.argmax(bit_type, axis=1)
        residual3 = _quant_stream(x3, alphas[flag_s], scale_lvl[flag_s],
                                  inv_lvl[flag_s])

    flag = jnp.argmax(bit_type, axis=1)
    p = jax.nn.softmax(bit_type, axis=1)

    bits_hard = s[flag]                                      # (B,)
    bits_soft = p @ s                                        # (B,)
    # straight-through: forward value = bits_hard, grad path through bits_soft
    bits_out = (lax.stop_gradient(bits_hard) - lax.stop_gradient(bits_soft)
                + bits_soft)
    bits = bits + bits_out
    weighted_bits = weighted_bits + bits_out / (lax.stop_gradient(p) @ s)

    residual = residual3.reshape(B, C, H, W)
    return [grad, residual, bits, weighted_bits]


if __name__ == "__main__":
    import numpy as np

    B, C, H, W = 2, 4, 16, 16                                # n_feats = 4
    key = jax.random.PRNGKey(0)
    k1, k2 = jax.random.split(key)

    x = jax.random.normal(k1, (B, C, H, W), dtype=jnp.float32)
    grad = jax.random.normal(k2, (B, 2), dtype=jnp.float32)
    bits = jnp.zeros((B,), jnp.float32)
    weighted_bits = jnp.zeros((B,), jnp.float32)

    params = init_bit_selector_params(n_feats=C, search_space=(4, 6, 8))

    # Streaming fallback first (no aliasing; reads pristine x) ...
    out_s = bit_selector_forward([grad, x, bits, weighted_bits], params,
                                 force_streaming=True)
    out_s = jax.tree_util.tree_map(jax.block_until_ready, out_s)

    # ... then the fused single-read path (may alias x's buffer internally).
    out = bit_selector_forward([grad, x, bits, weighted_bits], params)
    out = jax.tree_util.tree_map(jax.block_until_ready, out)

    assert out[0].shape == (B, 2)
    assert out[1].shape == (B, C, H, W)
    assert out[2].shape == (B,)
    assert out[3].shape == (B,)
    assert bool(jnp.all(jnp.isfinite(out[1])))

    # Fused and streaming paths must agree (fused std is two-pass: allow ulps).
    np.testing.assert_allclose(np.asarray(out[1]), np.asarray(out_s[1]),
                               rtol=1e-5, atol=1e-5)
    np.testing.assert_allclose(np.asarray(out[2]), np.asarray(out_s[2]),
                               rtol=1e-5, atol=1e-5)
    np.testing.assert_allclose(np.asarray(out[3]), np.asarray(out_s[3]),
                               rtol=1e-5, atol=1e-5)

    print("KERNEL_OK")
</pallas_src>

<mosaic_0001>
module attributes {stable_mosaic.version = 11 : i64} {
  func.func @_std_stream_kernel(%arg0: i32, %arg1: i32, %arg2: memref<1x4x256xf32, #tpu.memory_space<vmem>>, %arg3: memref<1x4x1xf32, #tpu.memory_space<vmem>>, %arg4: memref<4x1xf32, #tpu.memory_space<vmem>>, %arg5: memref<4x1xf32, #tpu.memory_space<vmem>>) attributes {dimension_semantics = [#tpu.dimension_semantics<parallel>, #tpu.dimension_semantics<arbitrary>], iteration_bounds = array<i64: 2, 1>, scalar_prefetch = 0 : i64, scratch_operands = 2 : i64, tpu.core_type = #tpu.core_type<tc>, window_params = [{transform_indices = @transform_0, window_bounds = array<i64: 1, 4, 256>}, {transform_indices = @transform_1, window_bounds = array<i64: 1, 4, 1>}]} {
    %c0_i32 = arith.constant 0 : i32
    %0 = arith.cmpi eq, %arg1, %c0_i32 : i32
    %1 = arith.extui %0 : i1 to i32
    %c0_i32_0 = arith.constant 0 : i32
    %2 = arith.cmpi ne, %1, %c0_i32_0 : i32
    scf.if %2 {
      %cst_14 = arith.constant 0.000000e+00 : f32
      %19 = vector.broadcast %cst_14 : f32 to vector<4x1xf32>
      %c0_15 = arith.constant 0 : index
      %c0_16 = arith.constant 0 : index
      %20 = vector.load %arg4[%c0_15, %c0_16] : memref<4x1xf32, #tpu.memory_space<vmem>>, vector<4x1xf32>
      tpu.vector_store %arg4[%c0_15, %c0_16], %19 {strides = array<i32>} : memref<4x1xf32, #tpu.memory_space<vmem>>, vector<4x1xf32>,
      %cst_17 = arith.constant 0.000000e+00 : f32
      %21 = vector.broadcast %cst_17 : f32 to vector<4x1xf32>
      %c0_18 = arith.constant 0 : index
      %c0_19 = arith.constant 0 : index
      %22 = vector.load %arg5[%c0_18, %c0_19] : memref<4x1xf32, #tpu.memory_space<vmem>>, vector<4x1xf32>
      tpu.vector_store %arg5[%c0_18, %c0_19], %21 {strides = array<i32>} : memref<4x1xf32, #tpu.memory_space<vmem>>, vector<4x1xf32>,
    } else {
    }
    %c0 = arith.constant 0 : index
    %c0_1 = arith.constant 0 : index
    %c0_2 = arith.constant 0 : index
    %3 = vector.load %arg2[%c0, %c0_1, %c0_2] : memref<1x4x256xf32, #tpu.memory_space<vmem>>, vector<1x4x256xf32>
    %4 = vector.shape_cast %3 : vector<1x4x256xf32> to vector<4x256xf32>
    %c0_3 = arith.constant 0 : index
    %c0_4 = arith.constant 0 : index
    %5 = vector.load %arg4[%c0_3, %c0_4] : memref<4x1xf32, #tpu.memory_space<vmem>>, vector<4x1xf32>
    %cst = arith.constant dense<0.000000e+00> : vector<4xf32>
    %6 = vector.multi_reduction <add>, %4, %cst [1] : vector<4x256xf32> to vector<4xf32>
    %7 = vector.shape_cast %6 : vector<4xf32> to vector<4x1xf32>
    %8 = arith.addf %5, %7 : vector<4x1xf32>
    %c0_5 = arith.constant 0 : index
    %c0_6 = arith.constant 0 : index
    %9 = vector.load %arg4[%c0_5, %c0_6] : memref<4x1xf32, #tpu.memory_space<vmem>>, vector<4x1xf32>
    tpu.vector_store %arg4[%c0_5, %c0_6], %8 {strides = array<i32>} : memref<4x1xf32, #tpu.memory_space<vmem>>, vector<4x1xf32>,
    %c0_7 = arith.constant 0 : index
    %c0_8 = arith.constant 0 : index
    %10 = vector.load %arg5[%c0_7, %c0_8] : memref<4x1xf32, #tpu.memory_space<vmem>>, vector<4x1xf32>
    %11 = arith.mulf %4, %4 : vector<4x256xf32>
    %cst_9 = arith.constant dense<0.000000e+00> : vector<4xf32>
    %12 = vector.multi_reduction <add>, %11, %cst_9 [1] : vector<4x256xf32> to vector<4xf32>
    %13 = vector.shape_cast %12 : vector<4xf32> to vector<4x1xf32>
    %14 = arith.addf %10, %13 : vector<4x1xf32>
    %c0_10 = arith.constant 0 : index
    %c0_11 = arith.constant 0 : index
    %15 = vector.load %arg5[%c0_10, %c0_11] : memref<4x1xf32, #tpu.memory_space<vmem>>, vector<4x1xf32>
    tpu.vector_store %arg5[%c0_10, %c0_11], %14 {strides = array<i32>} : memref<4x1xf32, #tpu.memory_space<vmem>>, vector<4x1xf32>,
    %c0_i32_12 = arith.constant 0 : i32
    %16 = arith.cmpi eq, %arg1, %c0_i32_12 : i32
    %17 = arith.extui %16 : i1 to i32
    %c0_i32_13 = arith.constant 0 : i32
    %18 = arith.cmpi ne, %17, %c0_i32_13 : i32
    scf.if %18 {
      %c0_14 = arith.constant 0 : index
      %c0_15 = arith.constant 0 : index
      %19 = vector.load %arg4[%c0_14, %c0_15] : memref<4x1xf32, #tpu.memory_space<vmem>>, vector<4x1xf32>
      %cst_16 = arith.constant 3.906250e-03 : f32
      %20 = vector.broadcast %cst_16 : f32 to vector<4x1xf32>
      %21 = arith.mulf %19, %20 : vector<4x1xf32>
      %c0_17 = arith.constant 0 : index
      %c0_18 = arith.constant 0 : index
      %22 = vector.load %arg5[%c0_17, %c0_18] : memref<4x1xf32, #tpu.memory_space<vmem>>, vector<4x1xf32>
      %cst_19 = arith.constant 2.560000e+02 : f32
      %23 = vector.broadcast %cst_19 : f32 to vector<4x1xf32>
      %24 = arith.mulf %23, %21 : vector<4x1xf32>
      %25 = arith.mulf %24, %21 : vector<4x1xf32>
      %26 = arith.subf %22, %25 : vector<4x1xf32>
      %cst_20 = arith.constant 0.00392156886 : f32
      %27 = vector.broadcast %cst_20 : f32 to vector<4x1xf32>
      %28 = arith.mulf %26, %27 : vector<4x1xf32>
      %cst_21 = arith.constant 0.000000e+00 : f32
      %29 = vector.broadcast %cst_21 : f32 to vector<4x1xf32>
      %30 = arith.maximumf %28, %29 : vector<4x1xf32>
      %31 = math.sqrt %30 : vector<4x1xf32>
      %c0_22 = arith.constant 0 : index
      %c0_23 = arith.constant 0 : index
      %c0_24 = arith.constant 0 : index
      %32 = vector.load %arg3[%c0_22, %c0_23, %c0_24] : memref<1x4x1xf32, #tpu.memory_space<vmem>>, vector<1x4x1xf32>
      %33 = vector.shape_cast %32 : vector<1x4x1xf32> to vector<4x1xf32>
      %34 = vector.shape_cast %31 : vector<4x1xf32> to vector<1x4x1xf32>
      tpu.vector_store %arg3[%c0_22, %c0_23, %c0_24], %34 {strides = array<i32>} : memref<1x4x1xf32, #tpu.memory_space<vmem>>, vector<1x4x1xf32>,
    } else {
    }
    return
  }
  func.func @transform_0(%arg0: i32, %arg1: i32) -> (i32, i32, i32) {
    %c0_i32 = arith.constant 0 : i32
    %c0_i32_0 = arith.constant 0 : i32
    return %arg0, %c0_i32, %arg1 : i32, i32, i32
  }
  func.func @transform_1(%arg0: i32, %arg1: i32) -> (i32, i32, i32) {
    %c0_i32 = arith.constant 0 : i32
    %c0_i32_0 = arith.constant 0 : i32
    %c0_i32_1 = arith.constant 0 : i32
    return %arg0, %c0_i32, %c0_i32_0 : i32, i32, i32
  }
}

</mosaic_0001>

<bundles_post_ra>
// kernel: tpu_custom_call.1
= control target key start
LH: loop header
LB: loop body
LE: loop exit
PB: predicated region body
PF: predicated region fallthrough
CT: control target
= control target key end

     0   :  { %6 = vsyncpa [#allocation5], 0  ;;  %s574_s0 = inlined_call_operand.hbm [shape: f32[2,4,256], index: 0, kind: input, shape index: {}]   ;;  %s575_s1 = inlined_call_operand.vmem [shape: f32[2,4,1], index: 1, kind: output, shape index: {}]  }
   0x1   :  { %8 = vsyncpa [#allocation5 + $0x1], 0  ;;  %s444_s6 = smov 0   ;;  %s446_s7 = smov 0  }
   0x2   :  { %s448_s8 = smov 0   ;;  %s450_s9 = smov 0  }
   0x3   :  { %s452_s10 = smov 0   ;;  %s454_s11 = smov 0  }
   0x4 LB: > { %s278_s12 = sadd.s32 4294967295, %s430_s11   ;;  %s26_s13 = sadd.s32 1, %s426_s10  ;;  %s430_s11 = sphi %s454_s11, %s14_s11   ;;  %s426_s10 = sphi %s452_s10, %s585_s10   ;;  %s422_s9 = sphi %s450_s9, %s584_s9   ;;  %s418_s8 = sphi %s448_s8, %s583_s8   ;;  %s414_s7 = sphi %s446_s7, %s582_s7   ;;  %s410_s6 = sphi %s444_s6, %s581_s6  }
   0x5   : > { %p28_p0 = scmp.ge.s32.totalorder %s26_s13, 2  ;;  %s35_s14 = sadd.s32 1, %s418_s8 }
   0x6   : > { %p42_p1 = scmp.ne.s32.totalorder %s418_s8, %s414_s7  ;;  %p43_p2 = scmp.eq.s32.totalorder %s430_s11, 0 }
   0x7   : > { %s587_s13 = smov (%p28_p0, %s26_s13), 0  ;;  %p48_p4 = scmp.ne.s32.totalorder %s414_s7, %s410_s6 }
   0x8   : > { %p480_p3 = por %p43_p2, %p42_p1  ;;  %s30_s16 = ssub.s32 %s426_s10, %s587_s13 }
   0x9   : > { %p49_p5 = scmp.eq.s32.totalorder %s278_s12, 0  ;;  %p33_p6 = scmp.eq.s32.totalorder %s30_s16, 0 }
   0xa   : > { %p297_p8 = scmp.lt.s32.totalorder %s430_s11, 2  ;;  %s98_s19 = sand.u32 1, %s418_s8  }
   0xb   : > { %p487_p7 = por %p49_p5, %p48_p4  ;;  %s290_s20 = sshll.u32 %s426_s10, 7 }
   0xc   : > { %s493_s18 = scalar_select %p33_p6, %s418_s8, %s35_s14  }
   0xd   : > { %s282_s21 = sshll.u32 %s98_s19, 3  ;;  %s500_s24 = scalar_lea.hbm %s574_s0, %s290_s20 }
   0xe   : > { %s102_s25 = scalar_lea.vmem [#allocation4], %s282_s21  ;;  %p504_p9 = pnand %p297_p8, %p480_p3 }
   0xf   : > { %s112_s26 = sshll.u32 %s102_s25, 4  ;;  %s99_s28 = scalar_lea.sflag [#allocation5], %s98_s19  ;;  %s508_s26 = int_to_ptr.vmem [resolvable:$true] %s112_s26 }
  0x10   : > { %s350_s29 = scalar_lea.hbm %s500_s24, 128  ;;  %p352_p13 = pneg %p504_p9 }
  0x11   : > { %p351_p12 = scmp.ne.s32.totalorder %s500_s24, %s350_s29  ;;  %s355_s3 = scalar_lea.hbm %s574_s0, 256 }
  0x12   : > { %p356_p2 = scmp.lt.u32.totalorder %s500_s24, %s574_s0  ;;  %p357_p3 = scmp.lt.u32.totalorder %s355_s3, %s350_s29 }
  0x13   : > { %p353_p0 = pnand %p352_p13, %p351_p12  ;;  %p359_p5 = scmp.lt.u32.totalorder %s350_s29, %s500_s24 }
  0x14   : > { %p358_p4 = por %p357_p3, %p356_p2 }
  0x15   : > { %p354_p1 = pneg %p353_p0 }
  0x16   : > { %p360_p6 = por %p359_p5, %p358_p4 }
  0x18   : > { %p361_p8 = pnand %p360_p6, %p354_p1 }
  0x1a   : > { %364 = shalt.err (!%p361_p8)
}
  0x1b   : > { %s365_s6 = scalar_lea.vmem %s508_s26, 128  ;;  %s432_s12 = smov [#allocation4]  }
  0x1c   : > { %p366_p12 = scmp.ne.s32.totalorder %s508_s26, %s365_s6  ;;  %s370_s14 = sshll.u32 %s432_s12, 4  ;;  %s371_s14 = int_to_ptr.vmem [resolvable:$false] %s370_s14 }
  0x1d   : > { %s372_s15 = scalar_lea.vmem %s371_s14, 256  ;;  %p373_p11 = scmp.lt.s32.totalorder %s508_s26, %s371_s14 }
  0x1e   : > { %p368_p0 = pnand %p366_p12, %p352_p13  ;;  %p374_p2 = scmp.lt.s32.totalorder %s372_s15, %s365_s6 }
  0x20   : > { %p369_p10 = pneg %p368_p0  ;;  %p375_p3 = por %p374_p2, %p373_p11 }
  0x22   : > { %p376_p4 = pnand %p375_p3, %p369_p10 }
  0x24   : > { %379 = shalt.err (!%p376_p4)
}
  0x25   : > { %296 = dma.hbm_to_vmem [thread:$0]  (!%p504_p9), %s500_s24, 128, %s508_s26, %s99_s28  }
  0x26   : > { %p579_p1 = scmp.lt.s32.totalorder %s430_s11, 3  ;;  %p580_p5 = scmp.ge.s32.totalorder %s430_s11, 1 }
  0x28   : > { %p118_p13 = pnand %p580_p5, %p579_p1 }
  0x29   : > { %s123_s16 = sand.u32 (!%p118_p13), 1, %s414_s7  }
  0x2a   : > { %121 = sbr.rel (%p118_p13) target bundleno = 236 (0xec), region = 24  ;;  %s286_s19 = sshll.u32 (!%p118_p13), %s123_s16, 3 }
  0x2b   : > { %s124_s20 = scalar_lea.sflag (!%p118_p13), [#allocation5], %s123_s16  ;;  %s127_s21 = scalar_lea.vmem (!%p118_p13), [#allocation4], %s286_s19 }
  0x31   : > { %405 = dma.done.wait (%p487_p7), %s124_s20, 128  }
  0x32   : > { %407 = vsyncadd (%p487_p7), %s124_s20, 4294967168  ;;  %vm154_vm0 = vcmask 3072   ;;  %v433_v0 = vmov 0.0   ;;  %vm162_vm1 = vcmask 1043456   ;;  %v157_v1 = vld [vmem:[%s127_s21] sm:$0xff]  ;;  %p146_p7 = scmp.lt.s32.totalorder %s422_s9, 1 }
  0x33   : > { %155 = vst.msk [vmem:[#allocation2] sm:$0xf] %vm154_vm0, %v433_v0  ;;  %156 = vst.msk [vmem:[#allocation3] sm:$0xf] %vm154_vm0, %v433_v0  ;;  %v160_v2 = vcombine.high %v157_v1, %v157_v1  ;;  %v163_v3 = vsel %vm162_vm1, %v157_v1, 0.0  ;;  %v172_v4 = vmul.f32 %v157_v1, %v157_v1 }
  0x34   : > { %s589_s9 = smov (!%p146_p7, %s422_s9), 1 }
  0x35   : > { %v164_v5 = vsel %vm162_vm1, %v160_v2, 0.0  ;;  %v174_v6 = vcombine.high %v172_v4, %v172_v4  ;;  %v176_v7 = vsel %vm162_vm1, %v172_v4, 0.0  ;;  %s287_s17 = sshll.u32 %s589_s9, 2 }
  0x36   : > { %v165_v8 = vadd.f32 %v164_v5, %v163_v3  ;;  %s149_s24 = scalar_lea.vmem %s575_s1, %s287_s17 }
  0x37   : > { %v177_v9 = vsel %vm162_vm1, %v174_v6, 0.0 }
  0x38   : > { %166 = vadd.xlane.f32.xlu0 %v165_v8  ;;  %v178_v10 = vadd.f32 %v177_v9, %v176_v7 }
  0x3a   : > { %v158_v11 = vld [vmem:[#allocation2] sm:$0xf]  ;;  %v171_v14 = vld [vmem:[#allocation3] sm:$0xf] }
  0x3c   : > { %179 = vadd.xlane.f32.xlu0 %v178_v10 }
  0xc5   : > { %v167_v12 = vpop.xlane.xlu0 %166 }
  0xc6   : > { %v168_v13 = vadd.f32 %v167_v12, %v158_v11 }
  0xc8   : > { %170 = vst.msk [vmem:[#allocation2] sm:$0xf] %vm154_vm0, %v168_v13 }
  0xc9   : > { %v180_v15 = vpop.xlane.xlu0 %179 }
  0xca   : > { %v181_v16 = vadd.f32 %v180_v15, %v171_v14 }
  0xcc   : > { %182 = vst.msk [vmem:[#allocation3] sm:$0xf] %vm154_vm0, %v181_v16 }
  0xcf   : > { %v186_v17 = vld [vmem:[#allocation2] sm:$0xf] }
  0xd0   : > { %v187_v18 = vmul.f32 0.00390625, %v186_v17 }
  0xd2   : > { %v189_v19 = vmul.f32 256.0, %v187_v18 }
  0xd3   : > { %v188_v20 = vld [vmem:[#allocation3] sm:$0xf] }
  0xd4   : > { %v190_v21 = vmul.f32 %v189_v19, %v187_v18 }
  0xd6   : > { %v191_v22 = vsub.f32 %v188_v20, %v190_v21 }
  0xd8   : > { %v192_v23 = vmul.f32 0.003921569, %v191_v22 }
  0xda   : > { %v193_v24 = vmax.f32 %v192_v23, 0.0 }
  0xdc   : > { %348 = vrsqrt.f32 %v193_v24  ;;  %vm196_vm2 = vcmp.eq.f32.partialorder %v193_v24, inf  ;;  %v199_v27 = vand.u32 2147483648, %v193_v24  ;;  %vm198_vm3 = vcmp.eq.f32.partialorder %v193_v24, 0.0 }
  0xe6   : > { %v349_v25 = vpop.eup %348 }
  0xe7   : > { %v195_v26 = vmul.f32 %v349_v25, %v193_v24 }
  0xe9   : > { %v197_v28 = vsel %vm196_vm2, %v193_v24, %v195_v26 }
  0xea   : > { %v200_v29 = vsel %vm198_vm3, %v199_v27, %v197_v28 }
  0xeb   : > { %201 = vst.msk [vmem:[%s149_s24] sm:$0xf] %vm154_vm0, %v200_v29 }
  0xec PF: > { %s14_s11 = sadd.s32 1, %s430_s11   ;;  %s581_s6 = smov %s414_s7 }
  0xed   : > { %p11_p9 = scmp.ge.s32.totalorder %s14_s11, 4   ;;  %s582_s7 = smov %s418_s8 }
  0xee   : > { %s583_s8 = smov %s493_s18  ;;  %s584_s9 = smov %s426_s10 }
  0xef   : > { %s585_s10 = smov %s587_s13  ;;  %13 = sbr.rel (!%p11_p9) target bundleno = 4 (0x4), region = 72 }
  0xf6   :  { %221 = vsyncpa [#allocation5], 1 }
  0xf7   :  { %223 = vsyncpa [#allocation5 + $0x1], 1 }

</bundles_post_ra>
